<compile_context>
chip_gen: v7x
topology: tpu7x:2x2x1
jax: 0.10.0
libtpu: 0.0.40
codegen_flags: <defaults>
</compile_context>

<pallas_src>
import functools

import jax
import jax.numpy as jnp
from jax.experimental import pallas as pl
from jax.experimental.pallas import tpu as pltpu


def _round_up(v, m):
    return (v + m - 1) // m * m


def _isoelastic_loss_kernel(target_ref, x_ref, out_ref, acc_ref, *,
                            a, n_total, tile_n, needs_mask):
    """Grid = (F-tiles [parallel], N-tiles [reduction, last]).

    Accumulates partial sums of the utility over the batch axis into an
    (8, tile_f) f32 scratch; finalizes (8->1 reduce, mean, negate) on the
    last reduction step.
    """
    n_idx = pl.program_id(1)
    last = pl.num_programs(1) - 1

    @pl.when(n_idx == 0)
    def _():
        acc_ref[...] = jnp.zeros_like(acc_ref)

    def utility(p):
        # NOTE: only defined for p > 0 — same domain assumption as the PyTorch
        # module; no guard is applied for non-positive P&L.
        if a == 1.0:
            return jnp.log(p)
        if a == 0.5:
            return jnp.sqrt(p)                 # 1 EUP op/elem instead of exp+log
        return jnp.exp((1.0 - a) * jnp.log(p))

    def accumulate(masked):
        x = x_ref[...].astype(jnp.float32)
        pnl = x - target_ref[0]                # P&L = input - target (SMEM scalar)
        if masked:
            # Rows past N (padded partial last tile): fill so utility(fill) == 0,
            # which makes a second post-utility select unnecessary.
            row = jax.lax.broadcasted_iota(jnp.int32, pnl.shape, 0)
            valid = (n_idx * tile_n + row) < n_total
            fill = 1.0 if a == 1.0 else 0.0    # log(1)=0 ; sqrt(0)=0 ; 0**(1-a)=0
            pnl = jnp.where(valid, pnl, fill)
        util = utility(pnl)
        tf = util.shape[-1]
        # (tile_n, tf) -> (tile_n//8, 8, tf), sum over vreg groups: pure VPU
        # adds, no cross-sublane (XLU) traffic in the hot loop.
        acc_ref[...] += jnp.sum(util.reshape(tile_n // 8, 8, tf), axis=0)

    if needs_mask:
        # Mask cost (iota/compare/select) is only paid on the single ragged tile.
        @pl.when(n_idx != last)
        def _():
            accumulate(masked=False)

        @pl.when(n_idx == last)
        def _():
            accumulate(masked=True)
    else:
        accumulate(masked=False)

    @pl.when(n_idx == last)
    def _():
        total = jnp.sum(acc_ref[...], axis=0, keepdims=True)   # single 8->1 XLU reduce
        out_ref[...] = (-(total * (1.0 / float(n_total)))).astype(out_ref.dtype)


def _tpu_caps():
    """Return (is_v7x_like, vmem_limit_cap_bytes).

    v7x: 64 MiB VMEM per TensorCore, 2 TCs per chip -> smaller budget, split F.
    v5e/v6e: 128 MiB VMEM, single TC -> bigger blocks, bigger limit.
    """
    small = False
    try:
        small = "v7" in jax.devices()[0].device_kind.lower()
    except Exception:
        pass
    if not small:
        try:
            small = int(pltpu.get_tpu_info().vmem_capacity_bytes) <= (64 << 20)
        except Exception:
            pass
    return small, ((48 << 20) if small else (96 << 20))


def isoelastic_loss(x, target=0.0, *, a=0.5, tile_n=None, tile_f=None):
    """Pallas implementation of IsoelasticLoss(a).forward(x, target).

    x: (N, F) array. Returns (F,) array = -isoelastic_utility(x - target).mean(0).
    """
    if not 0.0 < a <= 1.0:
        raise ValueError("Relative risk aversion coefficient should satisfy 0 < a <= 1.")
    # TODO(synk): only a scalar `target` is supported; PyTorch allows any
    # broadcastable tensor target.

    N, F = x.shape
    itemsize = jnp.dtype(x.dtype).itemsize
    is_v7x, vmem_cap = _tpu_caps()

    # VMEM working-set budget (leaves ~1.5x headroom under the vmem limit).
    budget = (vmem_cap * 2) // 3

    def bytes_per_row(tf):
        # Double-buffered input row + the f32 elementwise intermediates
        # (pnl/util) Mosaic materializes for the tile.
        return tf * (2 * itemsize + 2 * 4)

    def fixed_bytes(tf):
        # Double-buffered (1, tf) output block + (8, tf) f32 accumulator scratch.
        return 2 * tf * itemsize + 8 * tf * 4

    # --- feature (lane) tiling: prefer the full row (long contiguous DMAs) ---
    if tile_f is None:
        tile_f = F
        # v7x has 2 TensorCores: give the "parallel" F axis extent >= 2.
        if is_v7x and F % 256 == 0:
            tile_f = F // 2
        # Extremely wide rows: split lanes until an 8-row slab fits the budget.
        while (8 * bytes_per_row(tile_f) + fixed_bytes(tile_f) > budget
               and tile_f % 256 == 0):
            tile_f //= 2
    if F % tile_f != 0:
        raise ValueError("tile_f must divide F")
    if tile_f != F and tile_f % 128 != 0:
        raise ValueError("tile_f must be a multiple of 128 or equal to F")

    # --- batch (sublane) tiling: as big as the VMEM budget allows ------------
    avail = max(0, budget - fixed_bytes(tile_f))
    cap_rows = max(8, (avail // bytes_per_row(tile_f)) // 8 * 8)
    if tile_n is None:
        tile_n = min(_round_up(N, 8), cap_rows)
    else:
        tile_n = min(_round_up(tile_n, 8), _round_up(N, 8), cap_rows)

    grid = (F // tile_f, pl.cdiv(N, tile_n))     # reduction (N) axis last
    needs_mask = (N % tile_n) != 0

    target_arr = jnp.asarray([target], dtype=jnp.float32)

    kernel = functools.partial(
        _isoelastic_loss_kernel,
        a=float(a), n_total=N, tile_n=tile_n, needs_mask=needs_mask)

    # True working set (input double-buffer + f32 intermediates + out + acc)
    # with 1.5x headroom, clamped to the per-generation cap (<= budget * 1.5).
    needed = tile_n * bytes_per_row(tile_f) + fixed_bytes(tile_f)
    vmem_limit = int(min(vmem_cap, max(16 << 20, (needed * 3) // 2)))

    out = pl.pallas_call(
        kernel,
        out_shape=jax.ShapeDtypeStruct((1, F), x.dtype),
        grid_spec=pltpu.PrefetchScalarGridSpec(
            num_scalar_prefetch=0,
            grid=grid,
            in_specs=[
                pl.BlockSpec(memory_space=pltpu.SMEM),                # target scalar
                pl.BlockSpec((tile_n, tile_f), lambda f, n: (n, f)),  # x tile
            ],
            out_specs=pl.BlockSpec((1, tile_f), lambda f, n: (0, f)),
            scratch_shapes=[pltpu.VMEM((8, tile_f), jnp.float32)],
        ),
        compiler_params=pltpu.CompilerParams(
            dimension_semantics=("parallel", "arbitrary"),
            vmem_limit_bytes=vmem_limit,
        ),
    )(target_arr, x)

    return out[0]  # (F,)


if __name__ == "__main__":
    key = jax.random.PRNGKey(0)
    k1, k2 = jax.random.split(key)

    def ref_loss(x, target, a):
        p = x.astype(jnp.float32) - target
        u = jnp.log(p) if a == 1.0 else p ** (1.0 - a)
        return -u.mean(axis=0)

    # Case 1: a = 0.5 (sqrt fast path), batch divides tile exactly.
    N, F = 64, 128
    a, target = 0.5, 0.1
    # Strictly positive P&L (input - target > 0), matching the utility domain.
    x = jax.random.uniform(k1, (N, F), dtype=jnp.float32, minval=0.5, maxval=2.0)
    out = jax.block_until_ready(isoelastic_loss(x, target, a=a))
    ref = ref_loss(x, target, a)
    assert out.shape == ref.shape == (F,)
    assert jnp.allclose(out, ref, rtol=1e-5, atol=1e-5), (
        f"a=0.5 mismatch: max abs err = {jnp.max(jnp.abs(out - ref))}")

    # Case 2: general a, ragged N (exercises the masked, gated last tile) and
    # a small explicit tile so the reduction grid has several steps.
    N2, F2 = 100, 256
    a2, target2 = 0.7, 0.05
    x2 = jax.random.uniform(k2, (N2, F2), dtype=jnp.float32, minval=0.5, maxval=2.0)
    out2 = jax.block_until_ready(isoelastic_loss(x2, target2, a=a2, tile_n=32))
    ref2 = ref_loss(x2, target2, a2)
    assert out2.shape == (F2,)
    assert jnp.allclose(out2, ref2, rtol=1e-5, atol=1e-5), (
        f"a=0.7 mismatch: max abs err = {jnp.max(jnp.abs(out2 - ref2))}")

    # Case 3: a = 1 (log utility).
    out3 = jax.block_until_ready(isoelastic_loss(x, target, a=1.0))
    ref3 = ref_loss(x, target, 1.0)
    assert jnp.allclose(out3, ref3, rtol=1e-5, atol=1e-5), (
        f"a=1.0 mismatch: max abs err = {jnp.max(jnp.abs(out3 - ref3))}")

    print("KERNEL_OK")
</pallas_src>

<mosaic_0001>
module attributes {stable_mosaic.version = 11 : i64} {
  func.func @_isoelastic_loss_kernel(%arg0: i32, %arg1: i32, %arg2: memref<1xf32, #tpu.memory_space<smem>>, %arg3: memref<64x128xf32, #tpu.memory_space<vmem>>, %arg4: memref<1x128xf32, #tpu.memory_space<vmem>>, %arg5: memref<8x128xf32, #tpu.memory_space<vmem>>) attributes {dimension_semantics = [#tpu.dimension_semantics<parallel>, #tpu.dimension_semantics<arbitrary>], iteration_bounds = array<i64: 1, 1>, scalar_prefetch = 0 : i64, scratch_operands = 1 : i64, tpu.core_type = #tpu.core_type<tc>, window_params = [{transform_indices = @transform_0, window_bounds = array<i64: 1>}, {transform_indices = @transform_1, window_bounds = array<i64: 64, 128>}, {transform_indices = @transform_2, window_bounds = array<i64: 1, 128>}]} {
    %c0_i32 = arith.constant 0 : i32
    %0 = arith.cmpi eq, %arg1, %c0_i32 : i32
    %1 = arith.extui %0 : i1 to i32
    %c0_i32_0 = arith.constant 0 : i32
    %2 = arith.cmpi ne, %1, %c0_i32_0 : i32
    scf.if %2 {
      %cst_9 = arith.constant 0.000000e+00 : f32
      %16 = vector.broadcast %cst_9 : f32 to vector<8x128xf32>
      %c0_10 = arith.constant 0 : index
      %c0_11 = arith.constant 0 : index
      %17 = vector.load %arg5[%c0_10, %c0_11] : memref<8x128xf32, #tpu.memory_space<vmem>>, vector<8x128xf32>
      tpu.vector_store %arg5[%c0_10, %c0_11], %16 {strides = array<i32>} : memref<8x128xf32, #tpu.memory_space<vmem>>, vector<8x128xf32>,
    } else {
    }
    %c0 = arith.constant 0 : index
    %c0_1 = arith.constant 0 : index
    %3 = vector.load %arg3[%c0, %c0_1] : memref<64x128xf32, #tpu.memory_space<vmem>>, vector<64x128xf32>
    %c0_2 = arith.constant 0 : index
    %4 = memref.load %arg2[%c0_2] : memref<1xf32, #tpu.memory_space<smem>>
    %5 = vector.broadcast %4 : f32 to vector<64x128xf32>
    %6 = arith.subf %3, %5 : vector<64x128xf32>
    %7 = math.sqrt %6 : vector<64x128xf32>
    %c0_3 = arith.constant 0 : index
    %c0_4 = arith.constant 0 : index
    %8 = vector.load %arg5[%c0_3, %c0_4] : memref<8x128xf32, #tpu.memory_space<vmem>>, vector<8x128xf32>
    %9 = vector.shape_cast %7 : vector<64x128xf32> to vector<8x8x128xf32>
    %cst = arith.constant dense<0.000000e+00> : vector<8x128xf32>
    %10 = vector.multi_reduction <add>, %9, %cst [0] : vector<8x8x128xf32> to vector<8x128xf32>
    %11 = arith.addf %8, %10 : vector<8x128xf32>
    %c0_5 = arith.constant 0 : index
    %c0_6 = arith.constant 0 : index
    %12 = vector.load %arg5[%c0_5, %c0_6] : memref<8x128xf32, #tpu.memory_space<vmem>>, vector<8x128xf32>
    tpu.vector_store %arg5[%c0_5, %c0_6], %11 {strides = array<i32>} : memref<8x128xf32, #tpu.memory_space<vmem>>, vector<8x128xf32>,
    %c0_i32_7 = arith.constant 0 : i32
    %13 = arith.cmpi eq, %arg1, %c0_i32_7 : i32
    %14 = arith.extui %13 : i1 to i32
    %c0_i32_8 = arith.constant 0 : i32
    %15 = arith.cmpi ne, %14, %c0_i32_8 : i32
    scf.if %15 {
      %c0_9 = arith.constant 0 : index
      %c0_10 = arith.constant 0 : index
      %16 = vector.load %arg5[%c0_9, %c0_10] : memref<8x128xf32, #tpu.memory_space<vmem>>, vector<8x128xf32>
      %cst_11 = arith.constant dense<0.000000e+00> : vector<128xf32>
      %17 = vector.multi_reduction <add>, %16, %cst_11 [0] : vector<8x128xf32> to vector<128xf32>
      %18 = vector.shape_cast %17 : vector<128xf32> to vector<1x128xf32>
      %cst_12 = arith.constant 1.562500e-02 : f32
      %19 = vector.broadcast %cst_12 : f32 to vector<1x128xf32>
      %20 = arith.mulf %18, %19 : vector<1x128xf32>
      %cst_13 = arith.constant 0.000000e+00 : f32
      %21 = vector.broadcast %cst_13 : f32 to vector<1x128xf32>
      %22 = arith.subf %21, %20 : vector<1x128xf32>
      %c0_14 = arith.constant 0 : index
      %c0_15 = arith.constant 0 : index
      %23 = vector.load %arg4[%c0_14, %c0_15] : memref<1x128xf32, #tpu.memory_space<vmem>>, vector<1x128xf32>
      tpu.vector_store %arg4[%c0_14, %c0_15], %22 {strides = array<i32>} : memref<1x128xf32, #tpu.memory_space<vmem>>, vector<1x128xf32>,
    } else {
    }
    return
  }
  func.func @transform_0(%arg0: i32, %arg1: i32) -> i32 {
    %c0_i32 = arith.constant 0 : i32
    %c0_i32_0 = arith.constant 0 : i32
    return %c0_i32 : i32
  }
  func.func @transform_1(%arg0: i32, %arg1: i32) -> (i32, i32) {
    %c0_i32 = arith.constant 0 : i32
    return %arg1, %arg0 : i32, i32
  }
  func.func @transform_2(%arg0: i32, %arg1: i32) -> (i32, i32) {
    %c0_i32 = arith.constant 0 : i32
    %c0_i32_0 = arith.constant 0 : i32
    return %c0_i32, %arg0 : i32, i32
  }
}

</mosaic_0001>

<bundles_post_ra>
// kernel: tpu_custom_call.1
= control target key start
LH: loop header
LB: loop body
LE: loop exit
PB: predicated region body
PF: predicated region fallthrough
CT: control target
= control target key end

     0   :  { %8 = vsyncpa [#allocation5], 0  ;;  %s294_s0 = inlined_call_operand.<no memory space> [shape: f32[1], index: 0, kind: input, shape index: {}]   ;;  %s295_s1 = inlined_call_operand.hbm [shape: f32[64,128], index: 1, kind: input, shape index: {}]   ;;  %s296_s2 = inlined_call_operand.hbm [shape: f32[1,128], index: 2, kind: output, shape index: {}]  }
   0x1   :  { %9 = vsyncpa [#allocation6], 0  ;;  %s212_s9 = smov [#allocation4]   ;;  %s164_s13 = scalar_lea.hbm %s295_s1, 1024 }
   0x2   :  { %s17_s10 = sshll.u32 %s212_s9, 4  ;;  %p165_p0 = scmp.ne.s32.totalorder %s295_s1, %s164_s13  ;;  %s18_s10 = int_to_ptr.vmem [resolvable:$true] %s17_s10 }
   0x3   :  { %p168_p1 = scmp.lt.u32.totalorder %s164_s13, %s295_s1 }
   0x5   :  { %p170_p2 = pnand %p168_p1, %p165_p0 }
   0x7   :  { %173 = shalt.err (!%p170_p2)
}
   0x8   :  { %s174_s18 = scalar_lea.vmem %s18_s10, 1024  ;;  %p179_p4 = scmp.lt.s32.totalorder %s18_s10, %s18_s10 }
   0x9   :  { %p175_p3 = scmp.ne.s32.totalorder %s18_s10, %s174_s18  ;;  %p180_p5 = scmp.lt.s32.totalorder %s174_s18, %s174_s18 }
   0xb   :  { %p181_p6 = por %p180_p5, %p179_p4 }
   0xd   :  { %p182_p7 = pnand %p181_p6, %p175_p3 }
   0xf   :  { %185 = shalt.err (!%p182_p7)
}
  0x10   :  { %s213_s19 = smov 128   ;;  %s214_s20 = smov 8  }
  0x11   :  { %23 = dma.hbm_to_vmem [thread:$0]  %s295_s1, 1024, %s18_s10, [#allocation5], %s213_s19, %s213_s19, %s214_s20  }
  0x12   :  { %208 = dma.done.wait [#allocation5], 1024  }
  0x13   :  { %209 = vsyncadd [#allocation5], 4294966272  ;;  %v41_v0 = vstv %s294_s0  ;;  %v32_v1 = vld [vmem:[#allocation4] sm:$0xff]  ;;  %v33_v2 = vld [vmem:[#allocation4 + $0x8] sm:$0xff]  ;;  %s215_s0 = smov [#allocation7]  }
  0x14   :  { %v34_v3 = vld [vmem:[#allocation4 + $0x10] sm:$0xff]  ;;  %v35_v4 = vld [vmem:[#allocation4 + $0x18] sm:$0xff]  ;;  %v36_v5 = vld [vmem:[#allocation4 + $0x20] sm:$0xff]  ;;  %v42_v7 = vsub.f32 %v32_v1, %v41_v0  ;;  %v43_v8 = vsub.f32 %v33_v2, %v41_v0  ;;  %s135_s1 = sshll.u32 %s215_s0, 4  ;;  %s136_s1 = int_to_ptr.vmem [resolvable:$true] %s135_s1 }
  0x15   :  { %v37_v6 = vld [vmem:[#allocation4 + $0x28] sm:$0xff]  ;;  %v44_v9 = vsub.f32 %v34_v3, %v41_v0  ;;  %v38_v10 = vld [vmem:[#allocation4 + $0x30] sm:$0xff]  ;;  %v45_v11 = vsub.f32 %v35_v4, %v41_v0  ;;  %v39_v12 = vld [vmem:[#allocation4 + $0x38] sm:$0xff]  ;;  %v46_v13 = vsub.f32 %v36_v5, %v41_v0  ;;  %s186_s25 = scalar_lea.vmem %s136_s1, 16  ;;  %s190_s26 = scalar_lea.vmem %s136_s1, 32 }
  0x16   :  { %148 = vrsqrt.f32 %v42_v7  ;;  %v246_v14 = vsub.f32 %v37_v6, %v41_v0  ;;  %v248_v15 = vsub.f32 %v38_v10, %v41_v0  ;;  %v250_v16 = vsub.f32 %v39_v12, %v41_v0  ;;  %p187_p8 = scmp.ne.s32.totalorder %s136_s1, %s186_s25  ;;  %p191_p9 = scmp.lt.s32.totalorder %s136_s1, %s136_s1 }
  0x17   :  { %150 = vrsqrt.f32 %v43_v8  ;;  %vm52_vm0 = vcmp.eq.f32.partialorder %v42_v7, inf  ;;  %vm54_vm1 = vcmp.eq.f32.partialorder %v42_v7, 0.0  ;;  %v55_v17 = vand.u32 2147483648, %v42_v7  ;;  %p192_p10 = scmp.lt.s32.totalorder %s190_s26, %s186_s25 }
  0x18   :  { %152 = vrsqrt.f32 %v44_v9  ;;  %vm59_vm2 = vcmp.eq.f32.partialorder %v43_v8, inf  ;;  %vm61_vm3 = vcmp.eq.f32.partialorder %v43_v8, 0.0  ;;  %v62_v19 = vand.u32 2147483648, %v43_v8 }
  0x19   :  { %154 = vrsqrt.f32 %v45_v11  ;;  %vm66_vm4 = vcmp.eq.f32.partialorder %v44_v9, inf  ;;  %vm68_vm5 = vcmp.eq.f32.partialorder %v44_v9, 0.0  ;;  %v69_v22 = vand.u32 2147483648, %v44_v9  ;;  %p193_p11 = por %p192_p10, %p191_p9 }
  0x1a   :  { %156 = vrsqrt.f32 %v46_v13  ;;  %vm73_vm6 = vcmp.eq.f32.partialorder %v45_v11, inf  ;;  %vm75_vm7 = vcmp.eq.f32.partialorder %v45_v11, 0.0  ;;  %v76_v25 = vand.u32 2147483648, %v45_v11 }
  0x1b   :  { %158 = vrsqrt.f32 %v246_v14  ;;  %vm80_vm8 = vcmp.eq.f32.partialorder %v46_v13, inf  ;;  %vm82_vm9 = vcmp.eq.f32.partialorder %v46_v13, 0.0  ;;  %v83_v29 = vand.u32 2147483648, %v46_v13  ;;  %p194_p12 = pnand %p193_p11, %p187_p8 }
  0x1c   :  { %160 = vrsqrt.f32 %v248_v15  ;;  %vm87_vm10 = vcmp.eq.f32.partialorder %v246_v14, inf  ;;  %v90_v38 = vand.u32 2147483648, %v246_v14  ;;  %vm94_vm11 = vcmp.eq.f32.partialorder %v248_v15, inf }
  0x1d   :  { %162 = vrsqrt.f32 %v250_v16  ;;  %vm89_vm12 = vcmp.eq.f32.partialorder %v246_v14, 0.0  ;;  %v97_v52 = vand.u32 2147483648, %v248_v15  ;;  %vm101_vm13 = vcmp.eq.f32.partialorder %v250_v16, inf }
  0x1e   :  { %vm96_vm14 = vcmp.eq.f32.partialorder %v248_v15, 0.0  ;;  %v104_v56 = vand.u32 2147483648, %v250_v16  ;;  %vm103_vm15 = vcmp.eq.f32.partialorder %v250_v16, 0.0 }
  0x20   :  { %v149_v18 = vpop.eup %148 }
  0x21   :  { %v151_v20 = vpop.eup %150  ;;  %v51_v21 = vmul.f32 %v149_v18, %v42_v7 }
  0x22   :  { %v153_v23 = vpop.eup %152  ;;  %v58_v24 = vmul.f32 %v151_v20, %v43_v8 }
  0x23   :  { %v155_v26 = vpop.eup %154  ;;  %v53_v27 = vsel %vm52_vm0, %v42_v7, %v51_v21  ;;  %v65_v28 = vmul.f32 %v153_v23, %v44_v9 }
  0x24   :  { %v157_v30 = vpop.eup %156  ;;  %v56_v31 = vsel %vm54_vm1, %v55_v17, %v53_v27  ;;  %v60_v32 = vsel %vm59_vm2, %v43_v8, %v58_v24  ;;  %v72_v33 = vmul.f32 %v155_v26, %v45_v11 }
  0x25   :  { %v159_v34 = vpop.eup %158  ;;  %v63_v35 = vsel %vm61_vm3, %v62_v19, %v60_v32  ;;  %v67_v36 = vsel %vm66_vm4, %v44_v9, %v65_v28  ;;  %v79_v37 = vmul.f32 %v157_v30, %v46_v13 }
  0x26   :  { %v161_v39 = vpop.eup %160  ;;  %v70_v40 = vsel %vm68_vm5, %v69_v22, %v67_v36  ;;  %v74_v41 = vsel %vm73_vm6, %v45_v11, %v72_v33  ;;  %v86_v42 = vmul.f32 %v159_v34, %v246_v14  ;;  %v107_v43 = vadd.f32 %v63_v35, %v56_v31 }
  0x27   :  { %v163_v44 = vpop.eup %162  ;;  %v77_v45 = vsel %vm75_vm7, %v76_v25, %v74_v41  ;;  %v81_v46 = vsel %vm80_vm8, %v46_v13, %v79_v37  ;;  %v93_v47 = vmul.f32 %v161_v39, %v248_v15 }
  0x28   :  { %v88_v48 = vsel %vm87_vm10, %v246_v14, %v86_v42  ;;  %v100_v49 = vmul.f32 %v163_v44, %v250_v16  ;;  %v108_v50 = vadd.f32 %v107_v43, %v70_v40  ;;  %v84_v51 = vsel %vm82_vm9, %v83_v29, %v81_v46 }
  0x29   :  { %v95_v53 = vsel %vm94_vm11, %v248_v15, %v93_v47  ;;  %v91_v55 = vsel %vm89_vm12, %v90_v38, %v88_v48 }
  0x2a   :  { %v109_v54 = vadd.f32 %v108_v50, %v77_v45  ;;  %v102_v57 = vsel %vm101_vm13, %v250_v16, %v100_v49  ;;  %v98_v59 = vsel %vm96_vm14, %v97_v52, %v95_v53 }
  0x2b   :  { %v105_v61 = vsel %vm103_vm15, %v104_v56, %v102_v57 }
  0x2c   :  { %v110_v58 = vadd.f32 %v109_v54, %v84_v51 }
  0x2e   :  { %v111_v60 = vadd.f32 %v110_v58, %v91_v55 }
  0x30   :  { %v112_v62 = vadd.f32 %v111_v60, %v98_v59 }
  0x32   :  { %v113_v63 = vadd.f32 %v112_v62, %v105_v61 }
  0x34   :  { %v120_v0 = vrot.slane %v113_v63, 4 }
  0x36   :  { %v121_v1 = vadd.f32 %v120_v0, %v113_v63 }
  0x38   :  { %v122_v2 = vrot.slane %v121_v1, 2 }
  0x3a   :  { %v123_v3 = vadd.f32 %v122_v2, %v121_v1 }
  0x3c   :  { %v124_v4 = vrot.slane %v123_v3, 1 }
  0x3e   :  { %v125_v5 = vadd.f32 %v124_v4, %v123_v3 }
  0x40   :  { %v126_v6 = vmul.f32 0.015625, %v125_v5 }
  0x42   :  { %v127_v7 = vsub.f32 0.0, %v126_v6 }
  0x44   :  { %128 = vst [vmem:[#allocation7] sm:$0x1] %v127_v7 }
  0x45   :  { %197 = shalt.err (!%p194_p12)
}
  0x46   :  { %s198_s29 = scalar_lea.hbm %s296_s2, 16 }
  0x47   :  { %p199_p13 = scmp.ne.s32.totalorder %s296_s2, %s198_s29  ;;  %p202_p0 = scmp.lt.u32.totalorder %s198_s29, %s296_s2 }
  0x49   :  { %p204_p1 = pnand %p202_p0, %p199_p13 }
  0x4b   :  { %207 = shalt.err (!%p204_p1)
}
  0x4c   :  { %138 = dma.vmem_to_hbm [thread:$0]  %s136_s1, 16, %s296_s2, [#allocation6]  }
  0x4d   :  { %210 = dma.done.wait [#allocation6], 16  }
  0x4e   :  { %211 = vsyncadd [#allocation6], 4294967280 }
  0x4f   :  { %142 = vsyncpa [#allocation5], 1 }
  0x50   :  { %143 = vsyncpa [#allocation6], 1 }

</bundles_post_ra>
